<compile_context>
chip_gen: v6e
topology: v6e:2x2x1
jax: 0.10.0
libtpu: 0.0.40
codegen_flags: <defaults>
</compile_context>

<pallas_src>
import functools

import jax
import jax.numpy as jnp
from jax.experimental import pallas as pl
from jax.experimental.pallas import tpu as pltpu


def _round_up(x, m):
    return ((x + m - 1) // m) * m


def _pick_tile(padded_dim, desired, align):
    """Largest multiple-of-`align` divisor of `padded_dim` that is <= desired.

    `padded_dim` is guaranteed to be a multiple of `align`, so the result is
    always valid and the tile divides the padded dim exactly (no wasted tile).
    """
    desired = max(align, min(desired, padded_dim))
    best = align
    t = align
    while t <= desired:
        if padded_dim % t == 0:
            best = t
        t += align
    return best


def _linear_kernel(x_ref, w_ref, b_ref, o_ref):
    # x_ref: (tm, tk) compute dtype   w_ref: (tk, tn) compute dtype
    # b_ref: (1, tn) f32              o_ref: (tm, tn) f32, resident across k
    @pl.when(pl.program_id(2) == 0)
    def _():
        # Bias added exactly once, at accumulator init, in f32.
        o_ref[...] = jnp.broadcast_to(b_ref[...], o_ref.shape)

    # Plain NN contraction on the MXU (W already in (K, N) layout -> no
    # per-step transpose through the XLU), f32 accumulation.
    o_ref[...] += jnp.dot(x_ref[...], w_ref[...],
                          preferred_element_type=jnp.float32)


def prepare_prompt_linear_params(weight, bias, *, compute_dtype=jnp.bfloat16):
    """One-time parameter preprocessing (hoisted out of the per-call hot path).

    weight: (N, K) PyTorch nn.Linear layout, bias: (N,).
    Returns W padded+transposed to (Kp, Np) in `compute_dtype`, bias padded to
    (1, Np) in f32, and the true output width N.
    """
    N, K = weight.shape
    Np = _round_up(N, 128)
    Kp = _round_up(K, 128)
    wp = jnp.pad(weight, ((0, Np - N), (0, Kp - K)))
    w_kn = jnp.asarray(wp.T, dtype=compute_dtype)                 # (Kp, Np)
    b2 = jnp.pad(bias, (0, Np - N)).astype(jnp.float32).reshape(1, Np)
    return w_kn, b2, N


@functools.partial(jax.jit, static_argnames=("n_out", "tm", "tn", "tk"))
def prompt_linear_forward(x, w_kn, b2, *, n_out, tm=512, tn=512, tk=1024):
    """y = x @ W^T + b with pre-processed params from prepare_prompt_linear_params.

    x: (..., K) float32; w_kn: (Kp, Np) compute dtype; b2: (1, Np) float32.
    Returns (..., n_out) float32.
    """
    compute_dtype = w_kn.dtype
    *lead, K = x.shape
    Kp, Np = w_kn.shape
    assert K <= Kp, (K, Kp)

    x2 = x.reshape(-1, K)
    M = x2.shape[0]

    # bf16 packs 2 rows per sublane -> use 16-row alignment for bf16 blocks.
    m_align = 16 if compute_dtype == jnp.bfloat16 else 8
    Mp = _round_up(max(M, 1), m_align)

    # Tiles divide the padded dims exactly (no extra full tile of zero work).
    tm_ = _pick_tile(Mp, tm, m_align)
    tn_ = _pick_tile(Np, tn, 128)
    tk_ = _pick_tile(Kp, tk, 128)

    # v7x has 2 TensorCores: make sure at least one parallel axis has >=2 blocks.
    if Mp // tm_ == 1 and Np // tn_ == 1 and Np >= 256:
        tn_ = _pick_tile(Np, Np // 2, 128)

    xp = x2.astype(compute_dtype)
    if (Mp, Kp) != (M, K):
        xp = jnp.pad(xp, ((0, Mp - M), (0, Kp - K)))

    grid = (Mp // tm_, Np // tn_, Kp // tk_)
    grid_m, grid_n, grid_k = grid

    in_bytes = jnp.dtype(compute_dtype).itemsize
    cost = pl.CostEstimate(
        flops=2 * Mp * Np * Kp,
        transcendentals=0,
        # Actual HBM traffic incl. re-reads: x once per N-block, W once per
        # M-block, output written once, bias once.
        bytes_accessed=(Mp * Kp * grid_n + Kp * Np * grid_m) * in_bytes
        + (Mp * Np + Np) * 4,
    )

    # Double-buffered x/W/bias inputs + double-buffered f32 output block.
    vmem_bytes = (2 * (tm_ * tk_ + tk_ * tn_) * in_bytes
                  + 2 * tm_ * tn_ * 4 + 2 * tn_ * 4)
    vmem_limit = int(min(64 * 1024 * 1024,
                         max(32 * 1024 * 1024, 2 * vmem_bytes)))

    out = pl.pallas_call(
        _linear_kernel,
        out_shape=jax.ShapeDtypeStruct((Mp, Np), jnp.float32),
        grid_spec=pltpu.PrefetchScalarGridSpec(
            num_scalar_prefetch=0,
            grid=grid,
            in_specs=[
                pl.BlockSpec((tm_, tk_), lambda i, j, k: (i, k)),   # x tile
                pl.BlockSpec((tk_, tn_), lambda i, j, k: (k, j)),   # W (K, N) tile
                pl.BlockSpec((1, tn_), lambda i, j, k: (0, j)),     # bias tile
            ],
            out_specs=pl.BlockSpec((tm_, tn_), lambda i, j, k: (i, j)),
        ),
        compiler_params=pltpu.CompilerParams(
            dimension_semantics=("parallel", "parallel", "arbitrary"),
            vmem_limit_bytes=vmem_limit,
        ),
        cost_estimate=cost,
    )(xp, w_kn, b2)

    out = out[:M, :n_out]
    return out.reshape(*lead, n_out)


if __name__ == "__main__":
    # Small shapes consistent with the module: a batch of 8 embeddings,
    # input_dim=32 -> output_dim=16.
    M, input_dim, output_dim = 8, 32, 16

    key = jax.random.PRNGKey(0)
    kx, kw, kb = jax.random.split(key, 3)

    x = jax.random.normal(kx, (M, input_dim), dtype=jnp.float32)
    # Deterministic param init (mimics nn.Linear uniform(-1/sqrt(K), 1/sqrt(K)))
    bound = 1.0 / (input_dim ** 0.5)
    weight = jax.random.uniform(kw, (output_dim, input_dim),
                                minval=-bound, maxval=bound, dtype=jnp.float32)
    bias = jax.random.uniform(kb, (output_dim,),
                              minval=-bound, maxval=bound, dtype=jnp.float32)

    # One-time parameter prep (pad + transpose + bf16 cast), outside hot path.
    w_kn, b2, n_out = prepare_prompt_linear_params(weight, bias)

    y = prompt_linear_forward(x, w_kn, b2, n_out=n_out)
    y = jax.block_until_ready(y)

    # References: same bf16-operand / f32-accumulate numerics, plus a coarse
    # check against the pure-f32 PyTorch-equivalent forward.
    xe = x.astype(jnp.bfloat16).astype(jnp.float32)
    we = weight.astype(jnp.bfloat16).astype(jnp.float32)
    y_ref_bf16 = xe @ we.T + bias
    y_ref_f32 = x @ weight.T + bias

    assert y.shape == (M, output_dim)
    assert jnp.allclose(y, y_ref_bf16, atol=1e-3, rtol=1e-3)
    assert jnp.allclose(y, y_ref_f32, atol=3e-2, rtol=3e-2)

    print("KERNEL_OK")
</pallas_src>

<mosaic_0001>
module attributes {stable_mosaic.version = 11 : i64} {
  func.func @_linear_kernel(%arg0: i32, %arg1: i32, %arg2: i32, %arg3: memref<16x128xbf16, #tpu.memory_space<vmem>>, %arg4: memref<128x128xbf16, #tpu.memory_space<vmem>>, %arg5: memref<1x128xf32, #tpu.memory_space<vmem>>, %arg6: memref<16x128xf32, #tpu.memory_space<vmem>>) attributes {dimension_semantics = [#tpu.dimension_semantics<parallel>, #tpu.dimension_semantics<parallel>, #tpu.dimension_semantics<arbitrary>], iteration_bounds = array<i64: 1, 1, 1>, scalar_prefetch = 0 : i64, scratch_operands = 0 : i64, tpu.core_type = #tpu.core_type<tc>, window_params = [{transform_indices = @transform_0, window_bounds = array<i64: 16, 128>}, {transform_indices = @transform_1, window_bounds = array<i64: 128, 128>}, {transform_indices = @transform_2, window_bounds = array<i64: 1, 128>}, {transform_indices = @transform_3, window_bounds = array<i64: 16, 128>}]} {
    %c0_i32 = arith.constant 0 : i32
    %0 = arith.cmpi eq, %arg2, %c0_i32 : i32
    %1 = arith.extui %0 : i1 to i32
    %c0_i32_0 = arith.constant 0 : i32
    %2 = arith.cmpi ne, %1, %c0_i32_0 : i32
    scf.if %2 {
      %c0_8 = arith.constant 0 : index
      %c0_9 = arith.constant 0 : index
      %9 = vector.load %arg5[%c0_8, %c0_9] : memref<1x128xf32, #tpu.memory_space<vmem>>, vector<1x128xf32>
      %10 = vector.shape_cast %9 : vector<1x128xf32> to vector<1x128xf32>
      %11 = vector.broadcast %10 : vector<1x128xf32> to vector<16x128xf32>
      %c0_10 = arith.constant 0 : index
      %c0_11 = arith.constant 0 : index
      %12 = vector.load %arg6[%c0_10, %c0_11] : memref<16x128xf32, #tpu.memory_space<vmem>>, vector<16x128xf32>
      tpu.vector_store %arg6[%c0_10, %c0_11], %11 {strides = array<i32>} : memref<16x128xf32, #tpu.memory_space<vmem>>, vector<16x128xf32>,
    } else {
    }
    %c0 = arith.constant 0 : index
    %c0_1 = arith.constant 0 : index
    %3 = vector.load %arg6[%c0, %c0_1] : memref<16x128xf32, #tpu.memory_space<vmem>>, vector<16x128xf32>
    %c0_2 = arith.constant 0 : index
    %c0_3 = arith.constant 0 : index
    %4 = vector.load %arg3[%c0_2, %c0_3] : memref<16x128xbf16, #tpu.memory_space<vmem>>, vector<16x128xbf16>
    %c0_4 = arith.constant 0 : index
    %c0_5 = arith.constant 0 : index
    %5 = vector.load %arg4[%c0_4, %c0_5] : memref<128x128xbf16, #tpu.memory_space<vmem>>, vector<128x128xbf16>
    %cst = arith.constant dense<0.000000e+00> : vector<16x128xf32>
    %6 = tpu.matmul %4, %5, %cst {dimension_numbers = #tpu.dot_dimension_numbers<[1], [0], [0], [1], [0, 0, 1, 1], [], []>} : vector<16x128xbf16>, vector<128x128xbf16>, vector<16x128xf32> -> vector<16x128xf32>
    %7 = arith.addf %3, %6 : vector<16x128xf32>
    %c0_6 = arith.constant 0 : index
    %c0_7 = arith.constant 0 : index
    %8 = vector.load %arg6[%c0_6, %c0_7] : memref<16x128xf32, #tpu.memory_space<vmem>>, vector<16x128xf32>
    tpu.vector_store %arg6[%c0_6, %c0_7], %7 {strides = array<i32>} : memref<16x128xf32, #tpu.memory_space<vmem>>, vector<16x128xf32>,
    return
  }
  func.func @transform_0(%arg0: i32, %arg1: i32, %arg2: i32) -> (i32, i32) {
    %c0_i32 = arith.constant 0 : i32
    return %arg0, %arg2 : i32, i32
  }
  func.func @transform_1(%arg0: i32, %arg1: i32, %arg2: i32) -> (i32, i32) {
    %c0_i32 = arith.constant 0 : i32
    return %arg2, %arg1 : i32, i32
  }
  func.func @transform_2(%arg0: i32, %arg1: i32, %arg2: i32) -> (i32, i32) {
    %c0_i32 = arith.constant 0 : i32
    %c0_i32_0 = arith.constant 0 : i32
    return %c0_i32, %arg1 : i32, i32
  }
  func.func @transform_3(%arg0: i32, %arg1: i32, %arg2: i32) -> (i32, i32) {
    %c0_i32 = arith.constant 0 : i32
    return %arg0, %arg1 : i32, i32
  }
}

</mosaic_0001>

<bundles_post_ra>
// kernel: prompt_linear_forward.1
= control target key start
LH: loop header
LB: loop body
LE: loop exit
PB: predicated region body
PF: predicated region fallthrough
CT: control target
= control target key end

     0   :  { %8 = vsyncpa [#allocation3], 0  ;;  %s241_s12 = smov [#allocation2]   ;;  %s281_s0 = inlined_call_operand.vmem [shape: bf16[16,128], index: 0, kind: input, shape index: {}]   ;;  %s282_s1 = inlined_call_operand.hbm [shape: bf16[128,128], index: 1, kind: input, shape index: {}]   ;;  %s283_s2 = inlined_call_operand.vmem [shape: f32[1,128], index: 2, kind: input, shape index: {}]   ;;  %s284_s3 = inlined_call_operand.vmem [shape: f32[16,128], index: 3, kind: output, shape index: {}]  }
   0x1   :  { %s16_s13 = sshll.u32 %s241_s12, 4  ;;  %s17_s13 = int_to_ptr.vmem [resolvable:$true] %s16_s13 }
   0x2   :  { %s227_s14 = scalar_lea.vmem %s17_s13, 1024  ;;  %p232_p1 = scmp.lt.s32.totalorder %s17_s13, %s17_s13 }
   0x3   :  { %p228_p0 = scmp.ne.s32.totalorder %s17_s13, %s227_s14  ;;  %p233_p2 = scmp.lt.s32.totalorder %s227_s14, %s227_s14 }
   0x5   :  { %p234_p3 = por %p233_p2, %p232_p1 }
   0x7   :  { %p235_p4 = pnand %p234_p3, %p228_p0 }
   0x9   :  { %238 = shalt.err (!%p235_p4)
}
   0xa   :  { %s242_s15 = smov 64   ;;  %s243_s16 = smov 4  }
   0xb   :  { %22 = dma.hbm_to_vmem [thread:$0]  %s282_s1, 1024, %s17_s13, [#allocation3], %s242_s15, %s242_s15, %s243_s16  }
   0xc   :  { %239 = dma.done.wait [#allocation3], 1024  }
   0xd   :  { %240 = vsyncadd [#allocation3], 4294966272  ;;  %v244_v0 = vmov 0.0   ;;  %vm245_vm0 = vmmov 0   ;;  %v210_v1 = vld [vmem:[#allocation2 + $0x38] sm:$0xff]   ;;  %v211_v2 = vld [vmem:[#allocation2 + $0x30] sm:$0xff]  }
   0xe   :  { %185 = vmatprep.subr.bf16.mxu0 %v244_v0  ;;  %201 = vmatprep.mubr.msk.bf16.mxu0 %vm245_vm0, %v244_v0  ;;  %v212_v3 = vld [vmem:[#allocation2 + $0x28] sm:$0xff]   ;;  %v213_v4 = vld [vmem:[#allocation2 + $0x20] sm:$0xff]   ;;  %v214_v5 = vld [vmem:[#allocation2 + $0x18] sm:$0xff]  }
   0xf   :  { %186 = vmatpush3.bf16.msra.mxu0 %v210_v1  ;;  %v215_v6 = vld [vmem:[#allocation2 + $0x10] sm:$0xff]   ;;  %v216_v7 = vld [vmem:[#allocation2 + $0x8] sm:$0xff]   ;;  %v217_v8 = vld [vmem:[#allocation2] sm:$0xff]  }
  0x10   :  { %187 = vmatprep.subr.bf16.mxu0 %v244_v0  ;;  %v218_v9 = vld [vmem:[%s281_s0] sm:$0xff]  }
  0x11   :  { %v166_v10 = vld [vmem:[%s283_s2] ss:$0 sm:$0xff] }
  0x13   :  { %188 = vmatpush3.bf16.msra.mxu0 %v211_v2 }
  0x14   :  { %189 = vmatprep.subr.bf16.mxu0 %v244_v0 }
  0x17   :  { %190 = vmatpush3.bf16.msra.mxu0 %v212_v3 }
  0x18   :  { %191 = vmatprep.subr.bf16.mxu0 %v244_v0 }
  0x1b   :  { %192 = vmatpush3.bf16.msra.mxu0 %v213_v4 }
  0x1c   :  { %193 = vmatprep.subr.bf16.mxu0 %v244_v0 }
  0x1f   :  { %194 = vmatpush3.bf16.msra.mxu0 %v214_v5 }
  0x20   :  { %195 = vmatprep.subr.bf16.mxu0 %v244_v0 }
  0x23   :  { %196 = vmatpush3.bf16.msra.mxu0 %v215_v6 }
  0x24   :  { %197 = vmatprep.subr.bf16.mxu0 %v244_v0 }
  0x27   :  { %198 = vmatpush3.bf16.msra.mxu0 %v216_v7 }
  0x28   :  { %199 = vmatprep.subr.bf16.mxu0 %v244_v0 }
  0x2b   :  { %200 = vmatpush3.bf16.msra.mxu0 %v217_v8 }
  0x2e   :  { %202 = vmatmul.mubr.bf16.vlgmr.msra.gmra.mxu0 %v218_v9 }
  0xee   :  { %v150_v11 = vpop.f32.mrf.mxu0 }
  0xef   :  { %v157_v12 = vadd.f32 %v166_v10, %v150_v11 }
  0xf0   :  { %v203_v13 = vpop.f32.mrf.mxu0 }
  0xf1   :  { %159 = vst [vmem:[%s284_s3] sm:$0xff] %v157_v12 }
  0xf2   :  { %v153_v14 = vpop.f32.mrf.mxu0 }
  0xf3   :  { %v158_v15 = vadd.f32 %v166_v10, %v153_v14 }
  0xf4   :  { %v204_v16 = vpop.f32.mrf.mxu0 }
  0xf5   :  { %160 = vst [vmem:[%s284_s3 + $0x8] sm:$0xff] %v158_v15 }
  0xf6   :  { %165 = vsyncpa [#allocation3], 1 }

</bundles_post_ra>
